<compile_context>
chip_gen: v7x
topology: tpu7x:2x2x1
jax: 0.10.0
libtpu: 0.0.40
codegen_flags: <defaults>
</compile_context>

<pallas_src>
import functools

import jax
import jax.numpy as jnp
from jax.experimental import pallas as pl
from jax.experimental.pallas import tpu as pltpu


def _noisy_ce_kernel(logits_ref, targets_ref, out_ref, *, p_noisy: float,
                     n_rows: int, tile_n: int):
    logits = logits_ref[...].astype(jnp.float32)        # (tile_n, C) f32
    t = targets_ref[...]                                # (tile_n, 1) int32
    tn, c = logits.shape

    # Row-wise log-sum-exp.
    m = jnp.max(logits, axis=-1, keepdims=True)                         # (tile_n, 1)
    lse = jnp.log(jnp.sum(jnp.exp(logits - m), axis=-1, keepdims=True))  # (tile_n, 1)

    # Fused selection of the target logit (no one-hot / logp materialization):
    # CE(reduction='none') = (m + lse) - logits[row, target].
    col = jax.lax.broadcasted_iota(jnp.int32, (tn, c), 1)
    sel = jnp.sum(jnp.where(col == t, logits, 0.0), axis=-1, keepdims=True)
    losses = (m + lse) - sel                                             # (tile_n, 1)

    # weights = 1 - p + p * (1 - one_hot(t, C).float().sum(dim=1)).
    # one_hot row-sum is 1 for any in-range target, 0 otherwise -> compute it
    # straight from the index (no (N, C) pass).
    oh_sum = jnp.logical_and(t >= 0, t < c).astype(jnp.float32)          # (tile_n, 1)
    weights = (1.0 - p_noisy) + p_noisy * (1.0 - oh_sum)

    # Mask rows past N (ragged last tile); where() discards any padded NaNs.
    row = pl.program_id(0) * tile_n + jax.lax.broadcasted_iota(
        jnp.int32, (tn, 1), 0)
    wl = jnp.where(row < n_rows, losses * weights, 0.0)

    partial = jnp.sum(wl)                                                # scalar
    # Lane-dense (1, 8, 128) store of the per-tile partial sum.
    out_ref[...] = jnp.broadcast_to(partial, out_ref.shape)


def _choose_tile_n(n: int, c: int, itemsize: int) -> int:
    # ~8 MiB per logits block; Pallas double-buffers, so ~16 MiB of VMEM for
    # logits -> fits the 32 MiB scoped default on v5e/v6e and v7x's 64 MiB.
    budget = 8 * 1024 * 1024
    tile = budget // max(1, c * itemsize)
    tile = max(8, min(1024, (tile // 8) * 8))
    return min(tile, n)


def noisy_cross_entropy_loss(logits: jax.Array, targets: jax.Array,
                             p_noisy: float) -> jax.Array:
    """Pallas implementation of NoisyCrossEntropyLoss.forward.

    logits: (N, C) float (any float dtype; DMA'd natively), targets: (N,) ints.
    Returns a scalar f32.
    """
    n, c = logits.shape
    itemsize = jnp.dtype(logits.dtype).itemsize
    tile_n = _choose_tile_n(n, c, itemsize)
    grid_n = pl.cdiv(n, tile_n)

    targets2d = targets.astype(jnp.int32).reshape(n, 1)

    kernel = functools.partial(
        _noisy_ce_kernel, p_noisy=float(p_noisy), n_rows=n, tile_n=tile_n)

    cost = pl.CostEstimate(
        flops=5 * n * c,                          # max/sub/exp-sum/select/scale passes
        transcendentals=n * c + n,                # exp per element + log per row
        bytes_accessed=n * c * itemsize + n * 4 + grid_n * 8 * 128 * 4,
    )

    partials = pl.pallas_call(
        kernel,
        out_shape=jax.ShapeDtypeStruct((grid_n, 8, 128), jnp.float32),
        grid=(grid_n,),
        in_specs=[
            pl.BlockSpec((tile_n, c), lambda i: (i, 0)),   # native dtype, no host cast
            pl.BlockSpec((tile_n, 1), lambda i: (i, 0)),
        ],
        out_specs=pl.BlockSpec((1, 8, 128), lambda i: (i, 0, 0)),
        compiler_params=pltpu.CompilerParams(
            dimension_semantics=("parallel",),
        ),
        cost_estimate=cost,
    )(logits, targets2d)

    # Tiny final reduction + mean in JAX.
    return jnp.sum(partials[:, 0, 0]) / jnp.float32(n)


def _reference(logits, targets, p_noisy):
    # Pure-JAX reference mirroring the PyTorch module exactly.
    n, c = logits.shape
    logp = jax.nn.log_softmax(logits.astype(jnp.float32), axis=-1)
    losses = -jnp.take_along_axis(
        logp, targets[:, None].astype(jnp.int32), axis=-1)[:, 0]
    oh_sum = jax.nn.one_hot(targets, c, dtype=jnp.float32).sum(axis=1)
    weights = 1.0 - p_noisy + p_noisy * (1.0 - oh_sum)
    return jnp.mean(losses * weights)


if __name__ == "__main__":
    key = jax.random.PRNGKey(0)
    k1, k2 = jax.random.split(key)

    N, C = 8, 32              # batch=8, num_classes=32
    p_noisy = 0.3

    logits = jax.random.normal(k1, (N, C), dtype=jnp.float32)
    targets = jax.random.randint(k2, (N,), 0, C, dtype=jnp.int32)

    out = noisy_cross_entropy_loss(logits, targets, p_noisy)
    out = jax.block_until_ready(out)
    ref = _reference(logits, targets, p_noisy)
    assert jnp.allclose(out, ref, atol=1e-5, rtol=1e-5), (out, ref)

    # Native-dtype (bf16) path: kernel DMAs bf16 and upcasts in VMEM.
    logits_bf16 = logits.astype(jnp.bfloat16)
    out_bf16 = jax.block_until_ready(
        noisy_cross_entropy_loss(logits_bf16, targets, p_noisy))
    ref_bf16 = _reference(logits_bf16.astype(jnp.float32), targets, p_noisy)
    assert jnp.allclose(out_bf16, ref_bf16, atol=1e-4, rtol=1e-4), (out_bf16, ref_bf16)

    print("KERNEL_OK")
</pallas_src>

<mosaic_0001>
module attributes {stable_mosaic.version = 11 : i64} {
  func.func @_noisy_ce_kernel(%arg0: i32, %arg1: memref<8x32xf32, #tpu.memory_space<vmem>>, %arg2: memref<8x1xi32, #tpu.memory_space<vmem>>, %arg3: memref<1x8x128xf32, #tpu.memory_space<vmem>>) attributes {dimension_semantics = [#tpu.dimension_semantics<parallel>], iteration_bounds = array<i64: 1>, scalar_prefetch = 0 : i64, scratch_operands = 0 : i64, tpu.core_type = #tpu.core_type<tc>, window_params = [{transform_indices = @transform_0, window_bounds = array<i64: 8, 32>}, {transform_indices = @transform_1, window_bounds = array<i64: 8, 1>}, {transform_indices = @transform_2, window_bounds = array<i64: 1, 8, 128>}]} {
    %c0 = arith.constant 0 : index
    %c0_0 = arith.constant 0 : index
    %0 = vector.load %arg1[%c0, %c0_0] : memref<8x32xf32, #tpu.memory_space<vmem>>, vector<8x32xf32>
    %c0_1 = arith.constant 0 : index
    %c0_2 = arith.constant 0 : index
    %1 = vector.load %arg2[%c0_1, %c0_2] : memref<8x1xi32, #tpu.memory_space<vmem>>, vector<8x1xi32>
    %cst = arith.constant dense<0xFF800000> : vector<8xf32>
    %2 = vector.multi_reduction <maximumf>, %0, %cst [1] : vector<8x32xf32> to vector<8xf32>
    %3 = vector.shape_cast %2 : vector<8xf32> to vector<8x1xf32>
    %4 = vector.broadcast %3 : vector<8x1xf32> to vector<8x32xf32>
    %5 = arith.subf %0, %4 : vector<8x32xf32>
    %6 = math.exp %5 : vector<8x32xf32>
    %cst_3 = arith.constant dense<0.000000e+00> : vector<8xf32>
    %7 = vector.multi_reduction <add>, %6, %cst_3 [1] : vector<8x32xf32> to vector<8xf32>
    %8 = vector.shape_cast %7 : vector<8xf32> to vector<8x1xf32>
    %9 = math.log %8 : vector<8x1xf32>
    %10 = tpu.iota {dimensions = array<i32: 1>} : vector<8x32xi32>
    %11 = vector.broadcast %1 : vector<8x1xi32> to vector<8x32xi32>
    %12 = arith.cmpi eq, %10, %11 : vector<8x32xi32>
    %cst_4 = arith.constant 0.000000e+00 : f32
    %13 = vector.broadcast %cst_4 : f32 to vector<8x32xf32>
    %14 = arith.select %12, %0, %13 : vector<8x32xi1>, vector<8x32xf32>
    %cst_5 = arith.constant dense<0.000000e+00> : vector<8xf32>
    %15 = vector.multi_reduction <add>, %14, %cst_5 [1] : vector<8x32xf32> to vector<8xf32>
    %16 = vector.shape_cast %15 : vector<8xf32> to vector<8x1xf32>
    %17 = arith.addf %3, %9 : vector<8x1xf32>
    %18 = arith.subf %17, %16 : vector<8x1xf32>
    %c0_i32 = arith.constant 0 : i32
    %19 = vector.broadcast %c0_i32 : i32 to vector<8x1xi32>
    %20 = arith.cmpi sge, %1, %19 : vector<8x1xi32>
    %c32_i32 = arith.constant 32 : i32
    %21 = vector.broadcast %c32_i32 : i32 to vector<8x1xi32>
    %22 = arith.cmpi slt, %1, %21 : vector<8x1xi32>
    %23 = arith.andi %20, %22 : vector<8x1xi1>
    %24 = arith.extui %23 : vector<8x1xi1> to vector<8x1xi32>
    %25 = arith.sitofp %24 : vector<8x1xi32> to vector<8x1xf32>
    %cst_6 = arith.constant 1.000000e+00 : f32
    %26 = vector.broadcast %cst_6 : f32 to vector<8x1xf32>
    %27 = arith.subf %26, %25 : vector<8x1xf32>
    %cst_7 = arith.constant 3.000000e-01 : f32
    %28 = vector.broadcast %cst_7 : f32 to vector<8x1xf32>
    %29 = arith.mulf %28, %27 : vector<8x1xf32>
    %cst_8 = arith.constant 0.699999988 : f32
    %30 = vector.broadcast %cst_8 : f32 to vector<8x1xf32>
    %31 = arith.addf %30, %29 : vector<8x1xf32>
    %c8_i32 = arith.constant 8 : i32
    %32 = arith.muli %arg0, %c8_i32 : i32
    %33 = tpu.iota {dimensions = array<i32: 0>} : vector<8x1xi32>
    %34 = vector.broadcast %32 : i32 to vector<8x1xi32>
    %35 = arith.addi %34, %33 : vector<8x1xi32>
    %c8_i32_9 = arith.constant 8 : i32
    %36 = vector.broadcast %c8_i32_9 : i32 to vector<8x1xi32>
    %37 = arith.cmpi slt, %35, %36 : vector<8x1xi32>
    %38 = arith.mulf %18, %31 : vector<8x1xf32>
    %cst_10 = arith.constant 0.000000e+00 : f32
    %39 = vector.broadcast %cst_10 : f32 to vector<8x1xf32>
    %40 = arith.select %37, %38, %39 : vector<8x1xi1>, vector<8x1xf32>
    %41 = vector.shape_cast %40 : vector<8x1xf32> to vector<1x8x1xf32>
    %cst_11 = arith.constant dense<0.000000e+00> : vector<1xf32>
    %42 = vector.multi_reduction <add>, %41, %cst_11 [1, 2] : vector<1x8x1xf32> to vector<1xf32>
    %43 = vector.shape_cast %42 : vector<1xf32> to vector<1x1x1xf32>
    %44 = vector.extract %43[0, 0, 0] : f32 from vector<1x1x1xf32>
    %45 = vector.broadcast %44 : f32 to vector<1x8x128xf32>
    %c0_12 = arith.constant 0 : index
    %c0_13 = arith.constant 0 : index
    %c0_14 = arith.constant 0 : index
    %46 = vector.load %arg3[%c0_12, %c0_13, %c0_14] : memref<1x8x128xf32, #tpu.memory_space<vmem>>, vector<1x8x128xf32>
    tpu.vector_store %arg3[%c0_12, %c0_13, %c0_14], %45 {strides = array<i32>} : memref<1x8x128xf32, #tpu.memory_space<vmem>>, vector<1x8x128xf32>,
    return
  }
  func.func @transform_0(%arg0: i32) -> (i32, i32) {
    %c0_i32 = arith.constant 0 : i32
    %c0_i32_0 = arith.constant 0 : i32
    return %arg0, %c0_i32 : i32, i32
  }
  func.func @transform_1(%arg0: i32) -> (i32, i32) {
    %c0_i32 = arith.constant 0 : i32
    %c0_i32_0 = arith.constant 0 : i32
    return %arg0, %c0_i32 : i32, i32
  }
  func.func @transform_2(%arg0: i32) -> (i32, i32, i32) {
    %c0_i32 = arith.constant 0 : i32
    %c0_i32_0 = arith.constant 0 : i32
    %c0_i32_1 = arith.constant 0 : i32
    return %arg0, %c0_i32, %c0_i32_0 : i32, i32, i32
  }
}

</mosaic_0001>

<bundles_post_ra>
// kernel: tpu_custom_call.1
= control target key start
LH: loop header
LB: loop body
LE: loop exit
PB: predicated region body
PF: predicated region fallthrough
CT: control target
= control target key end

     0   :  { %vm14_vm0 = vcmask 261120   ;;  %s155_s0 = inlined_call_operand.vmem [shape: f32[8,32], index: 0, kind: input, shape index: {}]   ;;  %s156_s1 = inlined_call_operand.vmem [shape: s32[8,1], index: 1, kind: input, shape index: {}]   ;;  %s157_s2 = inlined_call_operand.hbm [shape: f32[1,8,128], index: 2, kind: output, shape index: {}]  }
   0x1   :  { %v12_v0 = vld [vmem:[%s155_s0] sm:$0xff] }
   0x2   :  { %7 = vsyncpa [#allocation3], 0  ;;  %v15_v1 = vsel %vm14_vm0, %v12_v0, -inf  ;;  %v116_v2 = vmov 0   ;;  %v13_v3 = vld [vmem:[%s156_s1] sm:$0xff]  ;;  %v26_v7 = vlaneseq  ;;  %v117_v15 = vmov 0.0  }
   0x3   :  { %87 = vset.pattern.permute.xlu0 %v116_v2  ;;  %vm38_vm2 = vcmp.ge.s32.totalorder %v13_v3, 0  ;;  %vm39_vm3 = vcmp.lt.s32.totalorder %v13_v3, 32  ;;  %vm54_vm5 = vcmask 7168   ;;  %s118_s0 = smov [#allocation2]  }
   0x4   :  { %16 = vmax.xlane.f32.xlu0 %v15_v1  ;;  %v27_v8 = vand.u32 127, %v26_v7  ;;  %vm40_vm4 = vmand %vm38_vm2, %vm39_vm3  ;;  %s73_s1 = sshll.u32 %s118_s0, 4  ;;  %s74_s1 = int_to_ptr.vmem [resolvable:$true] %s73_s1 }
   0x5   :  { %v81_v16 = vsel %vm40_vm4, 1.0, %v117_v15  ;;  %s92_s14 = scalar_lea.vmem %s74_s1, 128  ;;  %p97_p1 = scmp.lt.s32.totalorder %s74_s1, %s74_s1 }
   0x6   :  { %v43_v17 = vsub.f32 1.0, %v81_v16  ;;  %p93_p0 = scmp.ne.s32.totalorder %s74_s1, %s92_s14  ;;  %p98_p2 = scmp.lt.s32.totalorder %s92_s14, %s92_s14 }
   0x8   :  { %v44_v18 = vmul.f32 0.3, %v43_v17  ;;  %p99_p3 = por %p98_p2, %p97_p1 }
   0xa   :  { %v45_v23 = vadd.f32 0.7, %v44_v18  ;;  %p100_p4 = pnand %p99_p3, %p93_p0 }
  0x1a   :  { %29 = vperm.xlu0 %87, %v13_v3  }
  0x91   :  { %v17_v4 = vpop.xlane.xlu0 %16 }
  0x92   :  { %v18_v5 = vsub.f32 %v12_v0, %v17_v4 }
  0x94   :  { %v19_v6 = vmul.f32 1.442695, %v18_v5 }
  0x96   :  { %88 = vpow2.f32 %v19_v6 }
  0x99   :  { %v30_v9 = vpop.permute.xlu0 %29 }
  0x9a   :  { %vm31_vm1 = vcmp.eq.s32.totalorder %v27_v8, %v30_v9 }
  0x9b   :  { %v32_v11 = vsel %vm31_vm1, %v12_v0, 0.0 }
  0x9c   :  { %v33_v13 = vsel %vm14_vm0, %v32_v11, 0.0 }
  0xa0   :  { %v89_v10 = vpop.eup %88 }
  0xa1   :  { %v21_v12 = vsel %vm14_vm0, %v89_v10, 0.0 }
  0xa2   :  { %22 = vadd.xlane.f32.xlu1 %v21_v12 }
  0xa6   :  { %34 = vadd.xlane.f32.xlu1 %v33_v13 }
 0x12f   :  { %v23_v14 = vpop.xlane.xlu1 %22 }
 0x130   :  { %90 = vlog2.f32 %v23_v14 }
 0x133   :  { %v35_v21 = vpop.xlane.xlu1 %34 }
 0x13a   :  { %v91_v19 = vpop.eup %90 }
 0x13b   :  { %v25_v20 = vmul.f32 0.6931472, %v91_v19 }
 0x13d   :  { %v36_v22 = vadd.f32 %v25_v20, %v17_v4 }
 0x13f   :  { %v37_v24 = vsub.f32 %v36_v22, %v35_v21 }
 0x141   :  { %v52_v25 = vmul.f32 %v45_v23, %v37_v24 }
 0x143   :  { %v55_v26 = vsel %vm54_vm5, %v52_v25, 0.0 }
 0x144   :  { %56 = vadd.xlane.f32.xlu1 %v55_v26 }
 0x1d1   :  { %v57_v27 = vpop.xlane.xlu1 %56 }
 0x1d2   :  { %v58_v28 = vrot.slane %v57_v27, 4 }
 0x1d4   :  { %v59_v29 = vadd.f32 %v58_v28, %v57_v27 }
 0x1d6   :  { %v60_v30 = vrot.slane %v59_v29, 2 }
 0x1d8   :  { %v61_v31 = vadd.f32 %v60_v30, %v59_v29 }
 0x1da   :  { %v62_v32 = vrot.slane %v61_v31, 1 }
 0x1dc   :  { %v63_v33 = vadd.f32 %v62_v32, %v61_v31 }
 0x1de   :  { %82 = vpush %v63_v33 }
 0x20f   :  { %s83_s13 = spop %82 }
 0x210   :  { %v65_v34 = vstv %s83_s13 }
 0x211   :  { %66 = vst [vmem:[#allocation2] sm:$0xff] %v65_v34 }
 0x212   :  { %103 = shalt.err (!%p100_p4)
}
 0x213   :  { %s104_s17 = scalar_lea.hbm %s157_s2, 128 }
 0x214   :  { %p105_p5 = scmp.ne.s32.totalorder %s157_s2, %s104_s17  ;;  %p108_p6 = scmp.lt.u32.totalorder %s104_s17, %s157_s2 }
 0x216   :  { %p110_p7 = pnand %p108_p6, %p105_p5 }
 0x218   :  { %113 = shalt.err (!%p110_p7)
}
 0x219   :  { %76 = dma.vmem_to_hbm [thread:$0]  %s74_s1, 128, %s157_s2, [#allocation3]  }
 0x21a   :  { %114 = dma.done.wait [#allocation3], 128  }
 0x21b   :  { %115 = vsyncadd [#allocation3], 4294967168 }
 0x21c   :  { %80 = vsyncpa [#allocation3], 1 }

</bundles_post_ra>
